<compile_context>
chip_gen: v7x
topology: tpu7x:2x2x1
jax: 0.10.0
libtpu: 0.0.40
codegen_flags: <defaults>
</compile_context>

<pallas_src>
import jax
import jax.numpy as jnp
from jax.experimental import pallas as pl
from jax.experimental.pallas import tpu as pltpu

DIMS = [(784, 256), (256, 128), (128, 64), (64, 10)]


def mlp_kernel(x_ref,
               w1_ref, b1_ref,
               w2_ref, b2_ref,
               w3_ref, b3_ref,
               w4_ref, b4_ref,
               o_ref):
    # fc1: cast the streamed f32 rows to bf16 right at the MXU input,
    # accumulate in f32.
    h = jnp.dot(x_ref[...].astype(jnp.bfloat16), w1_ref[...],
                preferred_element_type=jnp.float32) + b1_ref[...]

    # mish(x) = x * tanh(softplus(x)) = x * (u^2 - 1) / (u^2 + 1),  u = 1 + e^x
    # (single clamped exp + near-free approx reciprocal; the clamp keeps u^2
    #  far from f32 overflow and for x > 20 the factor is ~1, i.e. mish ~= x)
    u = 1.0 + jnp.exp(jnp.minimum(h, 20.0))
    u2 = u * u
    h = h * (u2 - 1.0) * pl.reciprocal(u2 + 1.0, approx=True)

    # fc2 + relu
    h = jnp.dot(h.astype(jnp.bfloat16), w2_ref[...],
                preferred_element_type=jnp.float32) + b2_ref[...]
    h = jnp.maximum(h, 0.0)

    # fc3 + relu
    h = jnp.dot(h.astype(jnp.bfloat16), w3_ref[...],
                preferred_element_type=jnp.float32) + b3_ref[...]
    h = jnp.maximum(h, 0.0)

    # fc4 + log_softmax along dim=1 (all f32)
    logits = jnp.dot(h.astype(jnp.bfloat16), w4_ref[...],
                     preferred_element_type=jnp.float32) + b4_ref[...]
    m = jnp.max(logits, axis=1, keepdims=True)
    shifted = logits - m
    lse = jnp.log(jnp.sum(jnp.exp(shifted), axis=1, keepdims=True))
    o_ref[...] = shifted - lse


def _round_up(x, m):
    return (x + m - 1) // m * m


def _choose_tiling(batch, tile_batch):
    """Pick (tile_rows, padded_batch, n_tiles).

    n_tiles = cdiv(B, tile_batch), forced to an even count >= 2 whenever the
    batch is big enough to split (so v7x's two TensorCores both get work and
    the x stream can be double-buffered), then each tile rounded up to a
    multiple of 16 rows (bf16 sublane packing).  Padding waste is < 16 rows
    per tile.
    """
    n_tiles = max(1, pl.cdiv(batch, tile_batch))
    if batch >= 2 * 16:
        n_tiles = max(n_tiles, 2)
        if n_tiles % 2:
            n_tiles += 1
    tb = _round_up(pl.cdiv(batch, n_tiles), 16)
    return tb, n_tiles * tb, n_tiles


def classifier_forward(x_nchw, params, *, tile_batch=2048):
    """x_nchw: [B, 1, 28, 28] float32. Returns log-probs [B, 10] (float32)."""
    B = x_nchw.shape[0]
    # Same as torch x.view(B, -1); keep the original f32 dtype (the bf16 cast
    # for the MXU happens inside the kernel, avoiding an extra HBM round-trip).
    x = x_nchw.reshape(B, -1)
    in_dim = x.shape[1]

    tb, padded_b, n_tiles = _choose_tiling(B, tile_batch)
    if padded_b != B:
        x = jnp.pad(x, ((0, padded_b - B), (0, 0)))

    (w1, b1), (w2, b2), (w3, b3), (w4, b4) = params

    def row_spec(shape):          # streamed per batch tile
        return pl.BlockSpec(shape, lambda i: (i, 0))

    def resident(shape):          # weights/biases: same block every step
        return pl.BlockSpec(shape, lambda i: (0, 0))

    flops = 2 * padded_b * sum(fi * fo for fi, fo in DIMS)
    weight_bytes = sum(fi * fo * 2 + fo * 4 for fi, fo in DIMS)
    cost = pl.CostEstimate(
        flops=flops,
        transcendentals=padded_b * (256 + 10 + 1),
        bytes_accessed=(padded_b * in_dim * 4      # f32 x stream
                        + weight_bytes             # resident weights/biases
                        + padded_b * 10 * 4),      # f32 log-prob writeback
    )

    out = pl.pallas_call(
        mlp_kernel,
        out_shape=jax.ShapeDtypeStruct((padded_b, 10), jnp.float32),
        grid=(n_tiles,),
        in_specs=[
            row_spec((tb, in_dim)),
            resident(w1.shape), resident(b1.shape),
            resident(w2.shape), resident(b2.shape),
            resident(w3.shape), resident(b3.shape),
            resident(w4.shape), resident(b4.shape),
        ],
        out_specs=row_spec((tb, 10)),
        compiler_params=pltpu.CompilerParams(
            dimension_semantics=("parallel",),
            # f32 x tile (tb x 784) double-buffered + f32 intermediates +
            # resident weights fits comfortably under 48 MiB for tb=2048,
            # leaving headroom below v7x's 64 MiB physical VMEM.
            vmem_limit_bytes=48 * 1024 * 1024,
        ),
        cost_estimate=cost,
    )(x, w1, b1, w2, b2, w3, b3, w4, b4)

    return out[:B]


def init_params(key):
    """nn.Linear-style U(-1/sqrt(fan_in), 1/sqrt(fan_in)) init.

    Weights are stored transposed relative to torch ([in, out]) and in bf16
    (MXU-native, halves resident weight bytes); biases stay f32 as [1, out].
    """
    params = []
    for (fan_in, fan_out) in DIMS:
        key, kw, kb = jax.random.split(key, 3)
        bound = 1.0 / (fan_in ** 0.5)
        w = jax.random.uniform(kw, (fan_in, fan_out), jnp.float32, -bound, bound)
        b = jax.random.uniform(kb, (1, fan_out), jnp.float32, -bound, bound)
        params.append((w.astype(jnp.bfloat16), b))
    return params


def reference_forward(x_nchw, params):
    """Pure-JAX reference (same bf16 matmul inputs / f32 accumulation,
    exact softplus/tanh mish and exact log_softmax)."""
    B = x_nchw.shape[0]
    x = x_nchw.reshape(B, -1).astype(jnp.bfloat16)
    (w1, b1), (w2, b2), (w3, b3), (w4, b4) = params
    h = jnp.dot(x, w1, preferred_element_type=jnp.float32) + b1
    h = h * jnp.tanh(jax.nn.softplus(h))
    h = jnp.maximum(
        jnp.dot(h.astype(jnp.bfloat16), w2, preferred_element_type=jnp.float32) + b2, 0.0)
    h = jnp.maximum(
        jnp.dot(h.astype(jnp.bfloat16), w3, preferred_element_type=jnp.float32) + b3, 0.0)
    logits = jnp.dot(h.astype(jnp.bfloat16), w4,
                     preferred_element_type=jnp.float32) + b4
    return jax.nn.log_softmax(logits, axis=1)


if __name__ == "__main__":
    key = jax.random.PRNGKey(0)
    key, kx = jax.random.split(key)

    # small batch, MNIST-shaped NCHW input consistent with the 784-dim fc1
    x = jax.random.normal(kx, (4, 1, 28, 28), dtype=jnp.float32)
    params = init_params(key)

    out = classifier_forward(x, params)
    out = jax.block_until_ready(out)

    ref = reference_forward(x, params)
    assert out.shape == (4, 10)
    # tolerance accounts for the mish algebraic identity + approx reciprocal
    assert jnp.allclose(out, ref, atol=5e-3, rtol=5e-3), "mismatch vs reference"
    # log_softmax sanity: rows sum to 1 in prob space
    assert jnp.allclose(jnp.sum(jnp.exp(out), axis=1), 1.0, atol=1e-4)

    print("KERNEL_OK")
</pallas_src>

<mosaic_0001>
module attributes {stable_mosaic.version = 11 : i64} {
  func.func @mlp_kernel(%arg0: i32, %arg1: memref<16x784xf32, #tpu.memory_space<vmem>>, %arg2: memref<784x256xbf16, #tpu.memory_space<vmem>>, %arg3: memref<1x256xf32, #tpu.memory_space<vmem>>, %arg4: memref<256x128xbf16, #tpu.memory_space<vmem>>, %arg5: memref<1x128xf32, #tpu.memory_space<vmem>>, %arg6: memref<128x64xbf16, #tpu.memory_space<vmem>>, %arg7: memref<1x64xf32, #tpu.memory_space<vmem>>, %arg8: memref<64x10xbf16, #tpu.memory_space<vmem>>, %arg9: memref<1x10xf32, #tpu.memory_space<vmem>>, %arg10: memref<16x10xf32, #tpu.memory_space<vmem>>) attributes {dimension_semantics = [#tpu.dimension_semantics<parallel>], iteration_bounds = array<i64: 1>, scalar_prefetch = 0 : i64, scratch_operands = 0 : i64, tpu.core_type = #tpu.core_type<tc>, window_params = [{transform_indices = @transform_0, window_bounds = array<i64: 16, 784>}, {pipeline_mode = #tpu.pipeline_mode<synchronous>, transform_indices = @transform_1, window_bounds = array<i64: 784, 256>}, {pipeline_mode = #tpu.pipeline_mode<synchronous>, transform_indices = @transform_2, window_bounds = array<i64: 1, 256>}, {pipeline_mode = #tpu.pipeline_mode<synchronous>, transform_indices = @transform_3, window_bounds = array<i64: 256, 128>}, {pipeline_mode = #tpu.pipeline_mode<synchronous>, transform_indices = @transform_4, window_bounds = array<i64: 1, 128>}, {pipeline_mode = #tpu.pipeline_mode<synchronous>, transform_indices = @transform_5, window_bounds = array<i64: 128, 64>}, {pipeline_mode = #tpu.pipeline_mode<synchronous>, transform_indices = @transform_6, window_bounds = array<i64: 1, 64>}, {pipeline_mode = #tpu.pipeline_mode<synchronous>, transform_indices = @transform_7, window_bounds = array<i64: 64, 10>}, {pipeline_mode = #tpu.pipeline_mode<synchronous>, transform_indices = @transform_8, window_bounds = array<i64: 1, 10>}, {transform_indices = @transform_9, window_bounds = array<i64: 16, 10>}]} {
    %c0 = arith.constant 0 : index
    %c0_0 = arith.constant 0 : index
    %0 = vector.load %arg1[%c0, %c0_0] : memref<16x784xf32, #tpu.memory_space<vmem>>, vector<16x784xf32>
    %1 = arith.truncf %0 : vector<16x784xf32> to vector<16x784xbf16>
    %c0_1 = arith.constant 0 : index
    %c0_2 = arith.constant 0 : index
    %2 = vector.load %arg2[%c0_1, %c0_2] : memref<784x256xbf16, #tpu.memory_space<vmem>>, vector<784x256xbf16>
    %cst = arith.constant dense<0.000000e+00> : vector<16x256xf32>
    %3 = tpu.matmul %1, %2, %cst {dimension_numbers = #tpu.dot_dimension_numbers<[1], [0], [0], [1], [0, 0, 1, 1], [], []>} : vector<16x784xbf16>, vector<784x256xbf16>, vector<16x256xf32> -> vector<16x256xf32>
    %c0_3 = arith.constant 0 : index
    %c0_4 = arith.constant 0 : index
    %4 = vector.load %arg3[%c0_3, %c0_4] : memref<1x256xf32, #tpu.memory_space<vmem>>, vector<1x256xf32>
    %5 = vector.broadcast %4 : vector<1x256xf32> to vector<16x256xf32>
    %6 = arith.addf %3, %5 : vector<16x256xf32>
    %cst_5 = arith.constant 2.000000e+01 : f32
    %7 = vector.broadcast %cst_5 : f32 to vector<16x256xf32>
    %8 = arith.minimumf %6, %7 : vector<16x256xf32>
    %9 = math.exp %8 : vector<16x256xf32>
    %cst_6 = arith.constant 1.000000e+00 : f32
    %10 = vector.broadcast %cst_6 : f32 to vector<16x256xf32>
    %11 = arith.addf %10, %9 : vector<16x256xf32>
    %12 = arith.mulf %11, %11 : vector<16x256xf32>
    %cst_7 = arith.constant 1.000000e+00 : f32
    %13 = vector.broadcast %cst_7 : f32 to vector<16x256xf32>
    %14 = arith.subf %12, %13 : vector<16x256xf32>
    %15 = arith.mulf %6, %14 : vector<16x256xf32>
    %cst_8 = arith.constant 1.000000e+00 : f32
    %16 = vector.broadcast %cst_8 : f32 to vector<16x256xf32>
    %17 = arith.addf %12, %16 : vector<16x256xf32>
    %18 = tpu.reciprocal %17 {approx = true} : vector<16x256xf32> -> vector<16x256xf32>
    %19 = arith.mulf %15, %18 : vector<16x256xf32>
    %20 = arith.truncf %19 : vector<16x256xf32> to vector<16x256xbf16>
    %c0_9 = arith.constant 0 : index
    %c0_10 = arith.constant 0 : index
    %21 = vector.load %arg4[%c0_9, %c0_10] : memref<256x128xbf16, #tpu.memory_space<vmem>>, vector<256x128xbf16>
    %cst_11 = arith.constant dense<0.000000e+00> : vector<16x128xf32>
    %22 = tpu.matmul %20, %21, %cst_11 {dimension_numbers = #tpu.dot_dimension_numbers<[1], [0], [0], [1], [0, 0, 1, 1], [], []>} : vector<16x256xbf16>, vector<256x128xbf16>, vector<16x128xf32> -> vector<16x128xf32>
    %c0_12 = arith.constant 0 : index
    %c0_13 = arith.constant 0 : index
    %23 = vector.load %arg5[%c0_12, %c0_13] : memref<1x128xf32, #tpu.memory_space<vmem>>, vector<1x128xf32>
    %24 = vector.broadcast %23 : vector<1x128xf32> to vector<16x128xf32>
    %25 = arith.addf %22, %24 : vector<16x128xf32>
    %cst_14 = arith.constant 0.000000e+00 : f32
    %26 = vector.broadcast %cst_14 : f32 to vector<16x128xf32>
    %27 = arith.maximumf %25, %26 : vector<16x128xf32>
    %28 = arith.truncf %27 : vector<16x128xf32> to vector<16x128xbf16>
    %c0_15 = arith.constant 0 : index
    %c0_16 = arith.constant 0 : index
    %29 = vector.load %arg6[%c0_15, %c0_16] : memref<128x64xbf16, #tpu.memory_space<vmem>>, vector<128x64xbf16>
    %cst_17 = arith.constant dense<0.000000e+00> : vector<16x64xf32>
    %30 = tpu.matmul %28, %29, %cst_17 {dimension_numbers = #tpu.dot_dimension_numbers<[1], [0], [0], [1], [0, 0, 1, 1], [], []>} : vector<16x128xbf16>, vector<128x64xbf16>, vector<16x64xf32> -> vector<16x64xf32>
    %c0_18 = arith.constant 0 : index
    %c0_19 = arith.constant 0 : index
    %31 = vector.load %arg7[%c0_18, %c0_19] : memref<1x64xf32, #tpu.memory_space<vmem>>, vector<1x64xf32>
    %32 = vector.broadcast %31 : vector<1x64xf32> to vector<16x64xf32>
    %33 = arith.addf %30, %32 : vector<16x64xf32>
    %cst_20 = arith.constant 0.000000e+00 : f32
    %34 = vector.broadcast %cst_20 : f32 to vector<16x64xf32>
    %35 = arith.maximumf %33, %34 : vector<16x64xf32>
    %36 = arith.truncf %35 : vector<16x64xf32> to vector<16x64xbf16>
    %c0_21 = arith.constant 0 : index
    %c0_22 = arith.constant 0 : index
    %37 = vector.load %arg8[%c0_21, %c0_22] : memref<64x10xbf16, #tpu.memory_space<vmem>>, vector<64x10xbf16>
    %cst_23 = arith.constant dense<0.000000e+00> : vector<16x10xf32>
    %38 = tpu.matmul %36, %37, %cst_23 {dimension_numbers = #tpu.dot_dimension_numbers<[1], [0], [0], [1], [0, 0, 1, 1], [], []>} : vector<16x64xbf16>, vector<64x10xbf16>, vector<16x10xf32> -> vector<16x10xf32>
    %c0_24 = arith.constant 0 : index
    %c0_25 = arith.constant 0 : index
    %39 = vector.load %arg9[%c0_24, %c0_25] : memref<1x10xf32, #tpu.memory_space<vmem>>, vector<1x10xf32>
    %40 = vector.broadcast %39 : vector<1x10xf32> to vector<16x10xf32>
    %41 = arith.addf %38, %40 : vector<16x10xf32>
    %cst_26 = arith.constant dense<0xFF800000> : vector<16xf32>
    %42 = vector.multi_reduction <maximumf>, %41, %cst_26 [1] : vector<16x10xf32> to vector<16xf32>
    %43 = vector.shape_cast %42 : vector<16xf32> to vector<16x1xf32>
    %44 = vector.broadcast %43 : vector<16x1xf32> to vector<16x10xf32>
    %45 = arith.subf %41, %44 : vector<16x10xf32>
    %46 = math.exp %45 : vector<16x10xf32>
    %cst_27 = arith.constant dense<0.000000e+00> : vector<16xf32>
    %47 = vector.multi_reduction <add>, %46, %cst_27 [1] : vector<16x10xf32> to vector<16xf32>
    %48 = vector.shape_cast %47 : vector<16xf32> to vector<16x1xf32>
    %49 = math.log %48 : vector<16x1xf32>
    %50 = vector.broadcast %49 : vector<16x1xf32> to vector<16x10xf32>
    %51 = arith.subf %45, %50 : vector<16x10xf32>
    %c0_28 = arith.constant 0 : index
    %c0_29 = arith.constant 0 : index
    %52 = vector.load %arg10[%c0_28, %c0_29] : memref<16x10xf32, #tpu.memory_space<vmem>>, vector<16x10xf32>
    tpu.vector_store %arg10[%c0_28, %c0_29], %51 {strides = array<i32>} : memref<16x10xf32, #tpu.memory_space<vmem>>, vector<16x10xf32>,
    return
  }
  func.func @transform_0(%arg0: i32) -> (i32, i32) {
    %c0_i32 = arith.constant 0 : i32
    %c0_i32_0 = arith.constant 0 : i32
    return %arg0, %c0_i32 : i32, i32
  }
  func.func @transform_1(%arg0: i32) -> (i32, i32) {
    %c0_i32 = arith.constant 0 : i32
    %c0_i32_0 = arith.constant 0 : i32
    %c0_i32_1 = arith.constant 0 : i32
    return %c0_i32, %c0_i32_0 : i32, i32
  }
  func.func @transform_2(%arg0: i32) -> (i32, i32) {
    %c0_i32 = arith.constant 0 : i32
    %c0_i32_0 = arith.constant 0 : i32
    %c0_i32_1 = arith.constant 0 : i32
    return %c0_i32, %c0_i32_0 : i32, i32
  }
  func.func @transform_3(%arg0: i32) -> (i32, i32) {
    %c0_i32 = arith.constant 0 : i32
    %c0_i32_0 = arith.constant 0 : i32
    %c0_i32_1 = arith.constant 0 : i32
    return %c0_i32, %c0_i32_0 : i32, i32
  }
  func.func @transform_4(%arg0: i32) -> (i32, i32) {
    %c0_i32 = arith.constant 0 : i32
    %c0_i32_0 = arith.constant 0 : i32
    %c0_i32_1 = arith.constant 0 : i32
    return %c0_i32, %c0_i32_0 : i32, i32
  }
  func.func @transform_5(%arg0: i32) -> (i32, i32) {
    %c0_i32 = arith.constant 0 : i32
    %c0_i32_0 = arith.constant 0 : i32
    %c0_i32_1 = arith.constant 0 : i32
    return %c0_i32, %c0_i32_0 : i32, i32
  }
  func.func @transform_6(%arg0: i32) -> (i32, i32) {
    %c0_i32 = arith.constant 0 : i32
    %c0_i32_0 = arith.constant 0 : i32
    %c0_i32_1 = arith.constant 0 : i32
    return %c0_i32, %c0_i32_0 : i32, i32
  }
  func.func @transform_7(%arg0: i32) -> (i32, i32) {
    %c0_i32 = arith.constant 0 : i32
    %c0_i32_0 = arith.constant 0 : i32
    %c0_i32_1 = arith.constant 0 : i32
    return %c0_i32, %c0_i32_0 : i32, i32
  }
  func.func @transform_8(%arg0: i32) -> (i32, i32) {
    %c0_i32 = arith.constant 0 : i32
    %c0_i32_0 = arith.constant 0 : i32
    %c0_i32_1 = arith.constant 0 : i32
    return %c0_i32, %c0_i32_0 : i32, i32
  }
  func.func @transform_9(%arg0: i32) -> (i32, i32) {
    %c0_i32 = arith.constant 0 : i32
    %c0_i32_0 = arith.constant 0 : i32
    return %arg0, %c0_i32 : i32, i32
  }
}

</mosaic_0001>

<bundles_post_ra>
// kernel: tpu_custom_call.1
= control target key start
LH: loop header
LB: loop body
LE: loop exit
PB: predicated region body
PF: predicated region fallthrough
CT: control target
= control target key end

     0   :  { %14 = vsyncpa [#allocation3], 0  ;;  %s2044_s0 = inlined_call_operand.hbm [shape: f32[16,784], index: 0, kind: input, shape index: {}]   ;;  %s2045_s1 = inlined_call_operand.hbm [shape: bf16[784,256], index: 1, kind: input, shape index: {}]   ;;  %s2046_s2 = inlined_call_operand.vmem [shape: f32[1,256], index: 2, kind: input, shape index: {}]   ;;  %s2047_s3 = inlined_call_operand.vmem [shape: bf16[256,128], index: 3, kind: input, shape index: {}]   ;;  %s2048_s4 = inlined_call_operand.vmem [shape: f32[1,128], index: 4, kind: input, shape index: {}]   ;;  %s2049_s5 = inlined_call_operand.vmem [shape: bf16[128,64], index: 5, kind: input, shape index: {}]   ;;  %s2050_s6 = inlined_call_operand.vmem [shape: f32[1,64], index: 6, kind: input, shape index: {}]   ;;  %s2051_s7 = inlined_call_operand.vmem [shape: bf16[64,10], index: 7, kind: input, shape index: {}]   ;;  %s2052_s8 = inlined_call_operand.vmem [shape: f32[1,10], index: 8, kind: input, shape index: {}]   ;;  %s2053_s9 = inlined_call_operand.hbm [shape: f32[16,10], index: 9, kind: output, shape index: {}]  }
   0x1   :  { %15 = vsyncpa [#allocation6], 0 }
   0x2   :  { %16 = vsyncpa [#allocation4], 0  ;;  %s1824_s30 = smov [#allocation2]   ;;  %s1752_s13 = scalar_lea.hbm %s2044_s0, 1792 }
   0x3   :  { %s22_s10 = sshll.u32 %s1824_s30, 4  ;;  %p1753_p0 = scmp.ne.s32.totalorder %s2044_s0, %s1752_s13  ;;  %s23_s10 = int_to_ptr.vmem [resolvable:$true] %s22_s10 }
   0x4   :  { %p1756_p1 = scmp.lt.u32.totalorder %s1752_s13, %s2044_s0 }
   0x6   :  { %p1758_p2 = pnand %p1756_p1, %p1753_p0 }
   0x8   :  { %1761 = shalt.err (!%p1758_p2)
}
   0x9   :  { %s1762_s18 = scalar_lea.vmem %s23_s10, 1792  ;;  %p1767_p4 = scmp.lt.s32.totalorder %s23_s10, %s23_s10 }
   0xa   :  { %p1763_p3 = scmp.ne.s32.totalorder %s23_s10, %s1762_s18  ;;  %p1768_p5 = scmp.lt.s32.totalorder %s1762_s18, %s1762_s18 }
   0xc   :  { %p1769_p6 = por %p1768_p5, %p1767_p4 }
   0xe   :  { %p1770_p7 = pnand %p1769_p6, %p1763_p3 }
  0x10   :  { %1773 = shalt.err (!%p1770_p7)
}
  0x11   :  { %s1825_s19 = smov 896   ;;  %s1826_s20 = smov 56  }
  0x12   :  { %28 = dma.hbm_to_vmem [thread:$0]  %s2044_s0, 1792, %s23_s10, [#allocation3], %s1825_s19, %s1825_s19, %s1826_s20  }
  0x13   :  { %s1827_s23 = smov [#allocation5]   ;;  %s1774_s27 = scalar_lea.hbm %s2045_s1, 12544 }
  0x14   :  { %s34_s24 = sshll.u32 %s1827_s23, 4  ;;  %p1775_p8 = scmp.ne.s32.totalorder %s2045_s1, %s1774_s27  ;;  %s35_s24 = int_to_ptr.vmem [resolvable:$true] %s34_s24 }
  0x15   :  { %p1778_p9 = scmp.lt.u32.totalorder %s1774_s27, %s2045_s1 }
  0x17   :  { %p1780_p10 = pnand %p1778_p9, %p1775_p8 }
  0x19   :  { %1783 = shalt.err (!%p1780_p10)
}
  0x1a   :  { %s1784_s12 = scalar_lea.vmem %s35_s24, 12544  ;;  %p1789_p12 = scmp.lt.s32.totalorder %s35_s24, %s35_s24 }
  0x1b   :  { %p1785_p11 = scmp.ne.s32.totalorder %s35_s24, %s1784_s12  ;;  %p1790_p13 = scmp.lt.s32.totalorder %s1784_s12, %s1784_s12 }
  0x1d   :  { %p1791_p0 = por %p1790_p13, %p1789_p12 }
  0x1f   :  { %p1792_p1 = pnand %p1791_p0, %p1785_p11 }
  0x21   :  { %1795 = shalt.err (!%p1792_p1)
}
  0x22   :  { %s1828_s0 = smov 128   ;;  %s1829_s10 = smov 8  }
  0x23   :  { %40 = dma.hbm_to_vmem [thread:$0]  %s2045_s1, 12544, %s35_s24, [#allocation6], %s1828_s0, %s1828_s0, %s1829_s10  }
  0x24   :  { %1818 = dma.done.wait [#allocation3], 1792  }
  0x25   :  { %1819 = vsyncadd [#allocation3], 4294965504 }
  0x26   :  { %1820 = dma.done.wait [#allocation6], 12544  }
  0x27   :  { %1821 = vsyncadd [#allocation6], 4294954752  ;;  %v1553_v0 = vld [vmem:[#allocation5 + $0x104] ss:$8 sps:$4 sm:$0xff]   ;;  %v1555_v1 = vld [vmem:[#allocation5 + $0x100] ss:$8 sps:$4 sm:$0xff]  }
  0x28   :  { %730 = vmatprep.subr.bf16.mxu0 %v1553_v0  ;;  %v1556_v2 = vld [vmem:[#allocation5 + $0x114] ss:$8 sps:$4 sm:$0xff]   ;;  %v1558_v3 = vld [vmem:[#allocation5 + $0x110] ss:$8 sps:$4 sm:$0xff]   ;;  %v1559_v4 = vld [vmem:[#allocation5 + $0x124] ss:$8 sps:$4 sm:$0xff]  }
  0x29   :  { %731 = vmatpush1.bf16.msra.mxu0 %v1555_v1  ;;  %v1561_v5 = vld [vmem:[#allocation5 + $0x120] ss:$8 sps:$4 sm:$0xff]   ;;  %v1562_v6 = vld [vmem:[#allocation5 + $0x134] ss:$8 sps:$4 sm:$0xff]   ;;  %v1564_v7 = vld [vmem:[#allocation5 + $0x130] ss:$8 sps:$4 sm:$0xff]  }
  0x2a   :  { %732 = vmatprep.subr.bf16.mxu0 %v1556_v2  ;;  %v1565_v8 = vld [vmem:[#allocation5 + $0x144] ss:$8 sps:$4 sm:$0xff]   ;;  %v1567_v9 = vld [vmem:[#allocation5 + $0x140] ss:$8 sps:$4 sm:$0xff]   ;;  %v1568_v10 = vld [vmem:[#allocation5 + $0x154] ss:$8 sps:$4 sm:$0xff]  }
  0x2b   :  { %v1570_v11 = vld [vmem:[#allocation5 + $0x150] ss:$8 sps:$4 sm:$0xff]   ;;  %v1571_v12 = vld [vmem:[#allocation5 + $0x164] ss:$8 sps:$4 sm:$0xff]   ;;  %v1573_v16 = vld [vmem:[#allocation5 + $0x160] ss:$8 sps:$4 sm:$0xff]  }
  0x2c   :  { %v65_v13 = vld [vmem:[#allocation2 + $0x18] sm:$0xff]  ;;  %v72_v14 = vld [vmem:[#allocation2 + $0x50] sm:$0xff]  ;;  %v1574_v17 = vld [vmem:[#allocation5 + $0x174] ss:$8 sps:$4 sm:$0xff]   ;;  %vm683_vm0 = vcmask 130048   ;;  %vm1832_vm1 = vmmov 0  }
  0x2d   :  { %733 = vmatpush1.bf16.msra.mxu0 %v1558_v3  ;;  %v79_v15 = vpack.c.bf16 %v72_v14, %v65_v13  ;;  %v1607_v18 = vld [vmem:[#allocation5 + $0x4] ss:$8 sps:$4 sm:$0xff]   ;;  %v1576_v19 = vld [vmem:[#allocation5 + $0x170] ss:$8 sps:$4 sm:$0xff]   ;;  %v1612_v21 = vld [vmem:[#allocation5] ss:$8 sps:$4 sm:$0xff]  }
  0x2e   :  { %734 = vmatprep.subr.bf16.mxu0 %v1559_v4  ;;  %v1577_v20 = vld [vmem:[#allocation5 + $0x184] ss:$8 sps:$4 sm:$0xff]   ;;  %687 = vmatprep.subr.bf16.mxu1 %v1607_v18  ;;  %v1613_v22 = vld [vmem:[#allocation5 + $0x14] ss:$8 sps:$4 sm:$0xff]   ;;  %v1579_v23 = vld [vmem:[#allocation5 + $0x180] ss:$8 sps:$4 sm:$0xff]  }
  0x2f   :  { %762 = vmatprep.mubr.bf16.mxu0 %v79_v15  ;;  %688 = vmatpush1.bf16.msra.mxu1 %v1612_v21  ;;  %v1618_v24 = vld [vmem:[#allocation5 + $0x10] ss:$8 sps:$4 sm:$0xff]   ;;  %v1619_v25 = vld [vmem:[#allocation5 + $0x24] ss:$8 sps:$4 sm:$0xff]   ;;  %v1580_v26 = vld [vmem:[#allocation5 + $0x194] ss:$8 sps:$4 sm:$0xff]  }
  0x30   :  { %689 = vmatprep.subr.bf16.mxu1 %v1613_v22  ;;  %v1624_v27 = vld [vmem:[#allocation5 + $0x20] ss:$8 sps:$4 sm:$0xff]   ;;  %v1625_v28 = vld [vmem:[#allocation5 + $0x34] ss:$8 sps:$4 sm:$0xff]   ;;  %v1582_v29 = vld [vmem:[#allocation5 + $0x190] ss:$8 sps:$4 sm:$0xff]  }
  0x31   :  { %735 = vmatpush1.bf16.msra.mxu0 %v1561_v5  ;;  %v1583_v30 = vld [vmem:[#allocation5 + $0x1a4] ss:$8 sps:$4 sm:$0xff]   ;;  %v1630_v31 = vld [vmem:[#allocation5 + $0x30] ss:$8 sps:$4 sm:$0xff]   ;;  %v1585_v33 = vld [vmem:[#allocation5 + $0x1a0] ss:$8 sps:$4 sm:$0xff]  }
  0x32   :  { %736 = vmatprep.subr.bf16.mxu0 %v1562_v6  ;;  %v1631_v32 = vld [vmem:[#allocation5 + $0x44] ss:$8 sps:$4 sm:$0xff]   ;;  %v1586_v34 = vld [vmem:[#allocation5 + $0x1b4] ss:$8 sps:$4 sm:$0xff]   ;;  %v1636_v35 = vld [vmem:[#allocation5 + $0x40] ss:$8 sps:$4 sm:$0xff]  }
  0x33   :  { %690 = vmatpush1.bf16.msra.mxu1 %v1618_v24  ;;  %v1637_v36 = vld [vmem:[#allocation5 + $0x54] ss:$8 sps:$4 sm:$0xff]   ;;  %v1588_v37 = vld [vmem:[#allocation5 + $0x1b0] ss:$8 sps:$4 sm:$0xff]   ;;  %v1589_v38 = vld [vmem:[#allocation5 + $0x1c4] ss:$8 sps:$4 sm:$0xff]  }
  0x34   :  { %691 = vmatprep.subr.bf16.mxu1 %v1619_v25  ;;  %v1642_v39 = vld [vmem:[#allocation5 + $0x50] ss:$8 sps:$4 sm:$0xff]   ;;  %v1643_v40 = vld [vmem:[#allocation5 + $0x64] ss:$8 sps:$4 sm:$0xff]   ;;  %v1591_v41 = vld [vmem:[#allocation5 + $0x1c0] ss:$8 sps:$4 sm:$0xff]  }
  0x35   :  { %737 = vmatpush1.bf16.msra.mxu0 %v1564_v7  ;;  %v1592_v42 = vld [vmem:[#allocation5 + $0x1d4] ss:$8 sps:$4 sm:$0xff]   ;;  %v1648_v43 = vld [vmem:[#allocation5 + $0x60] ss:$8 sps:$4 sm:$0xff]   ;;  %v1594_v45 = vld [vmem:[#allocation5 + $0x1d0] ss:$8 sps:$4 sm:$0xff]  }
  0x36   :  { %738 = vmatprep.subr.bf16.mxu0 %v1565_v8  ;;  %v1649_v44 = vld [vmem:[#allocation5 + $0x74] ss:$8 sps:$4 sm:$0xff]   ;;  %v1595_v46 = vld [vmem:[#allocation5 + $0x1e4] ss:$8 sps:$4 sm:$0xff]   ;;  %v1654_v47 = vld [vmem:[#allocation5 + $0x70] ss:$8 sps:$4 sm:$0xff]  }
  0x37   :  { %692 = vmatpush1.bf16.msra.mxu1 %v1624_v27  ;;  %v1655_v48 = vld [vmem:[#allocation5 + $0x84] ss:$8 sps:$4 sm:$0xff]   ;;  %v1597_v49 = vld [vmem:[#allocation5 + $0x1e0] ss:$8 sps:$4 sm:$0xff]   ;;  %v1598_v50 = vld [vmem:[#allocation5 + $0x1f4] ss:$8 sps:$4 sm:$0xff]  }
  0x38   :  { %693 = vmatprep.subr.bf16.mxu1 %v1625_v28  ;;  %v1660_v51 = vld [vmem:[#allocation5 + $0x80] ss:$8 sps:$4 sm:$0xff]   ;;  %v1661_v52 = vld [vmem:[#allocation5 + $0x94] ss:$8 sps:$4 sm:$0xff]   ;;  %v1600_v53 = vld [vmem:[#allocation5 + $0x1f0] ss:$8 sps:$4 sm:$0xff]  }
  0x39   :  { %739 = vmatpush1.bf16.msra.mxu0 %v1567_v9  ;;  %v64_v54 = vld [vmem:[#allocation2 + $0x10] sm:$0xff]  ;;  %v71_v55 = vld [vmem:[#allocation2 + $0x48] sm:$0xff]  ;;  %v74_v62 = vld [vmem:[#allocation2 + $0x60] sm:$0xff]  ;;  %vm1234_vm2 = vcmask 523264   ;;  %vm1279_vm3 = vcmask 80896  }
  0x3a   :  { %740 = vmatprep.subr.bf16.mxu0 %v1568_v10  ;;  %v1603_v56 = vld [vmem:[#allocation5 + $0x204] ss:$8 sps:$4 sm:$0xff]   ;;  %v1666_v57 = vld [vmem:[#allocation5 + $0x90] ss:$8 sps:$4 sm:$0xff]   ;;  %v1601_v58 = vld [vmem:[#allocation5 + $0x200] ss:$8 sps:$4 sm:$0xff]   ;;  %v78_v59 = vpack.c.bf16 %v71_v55, %v64_v54 }
  0x3b   :  { %694 = vmatpush1.bf16.msra.mxu1 %v1630_v31  ;;  %v1667_v60 = vld [vmem:[#allocation5 + $0xa4] ss:$8 sps:$4 sm:$0xff]   ;;  %v67_v61 = vld [vmem:[#allocation2 + $0x28] sm:$0xff]  ;;  %v1672_v1 = vld [vmem:[#allocation5 + $0xa0] ss:$8 sps:$4 sm:$0xff]  }
  0x3c   :  { %695 = vmatprep.subr.bf16.mxu1 %v1631_v32  ;;  %v1606_v63 = vld [vmem:[#allocation5 + $0x214] ss:$8 sps:$4 sm:$0xff]   ;;  %v81_v0 = vpack.c.bf16 %v74_v62, %v67_v61  ;;  %v1604_v3 = vld [vmem:[#allocation5 + $0x210] ss:$8 sps:$4 sm:$0xff]   ;;  %v1611_v4 = vld [vmem:[#allocation5 + $0x224] ss:$8 sps:$4 sm:$0xff]  }
  0x3d   :  { %741 = vmatpush1.bf16.msra.mxu0 %v1570_v11  ;;  %v1673_v2 = vld [vmem:[#allocation5 + $0xb4] ss:$8 sps:$4 sm:$0xff]   ;;  %v1609_v7 = vld [vmem:[#allocation5 + $0x220] ss:$8 sps:$4 sm:$0xff]   ;;  %v1678_v8 = vld [vmem:[#allocation5 + $0xb0] ss:$8 sps:$4 sm:$0xff]  }
  0x3e   :  { %742 = vmatprep.subr.bf16.mxu0 %v1571_v12  ;;  %v63_v5 = vld [vmem:[#allocation2 + $0x8] sm:$0xff]  ;;  %v70_v6 = vld [vmem:[#allocation2 + $0x40] sm:$0xff]  ;;  %v1679_v11 = vld [vmem:[#allocation5 + $0xc4] ss:$8 sps:$4 sm:$0xff]  }
  0x3f   :  { %696 = vmatpush1.bf16.msra.mxu1 %v1636_v35  ;;  %v77_v9 = vpack.c.bf16 %v70_v6, %v63_v5  ;;  %v1617_v10 = vld [vmem:[#allocation5 + $0x234] ss:$8 sps:$4 sm:$0xff]   ;;  %v1684_v12 = vld [vmem:[#allocation5 + $0xc0] ss:$8 sps:$4 sm:$0xff]   ;;  %v1615_v14 = vld [vmem:[#allocation5 + $0x230] ss:$8 sps:$4 sm:$0xff]  }
  0x40   :  { %697 = vmatprep.subr.bf16.mxu1 %v1637_v36  ;;  %v1685_v13 = vld [vmem:[#allocation5 + $0xd4] ss:$8 sps:$4 sm:$0xff]   ;;  %v1623_v15 = vld [vmem:[#allocation5 + $0x244] ss:$8 sps:$4 sm:$0xff]   ;;  %v1621_v18 = vld [vmem:[#allocation5 + $0x240] ss:$8 sps:$4 sm:$0xff]  }
  0x41   :  { %743 = vmatpush1.bf16.msra.mxu0 %v1573_v16  ;;  %719 = vmatprep.mubr.bf16.mxu1 %v77_v9  ;;  %v1690_v16 = vld [vmem:[#allocation5 + $0xd0] ss:$8 sps:$4 sm:$0xff]   ;;  %v1697_v21 = vld [vmem:[#allocation5 + $0xf4] ss:$8 sps:$4 sm:$0xff]   ;;  %v1633_v27 = vld [vmem:[#allocation5 + $0x260] ss:$8 sps:$4 sm:$0xff]  }
  0x42   :  { %744 = vmatprep.subr.bf16.mxu0 %v1574_v17  ;;  %v1691_v17 = vld [vmem:[#allocation5 + $0xe4] ss:$8 sps:$4 sm:$0xff]   ;;  %v1627_v22 = vld [vmem:[#allocation5 + $0x250] ss:$8 sps:$4 sm:$0xff]   ;;  %v1641_v28 = vld [vmem:[#allocation5 + $0x274] ss:$8 sps:$4 sm:$0xff]  }
  0x43   :  { %698 = vmatpush1.bf16.msra.mxu1 %v1642_v39  ;;  %v1699_v24 = vld [vmem:[#allocation5 + $0xf0] ss:$8 sps:$4 sm:$0xff]   ;;  %v1647_v31 = vld [vmem:[#allocation5 + $0x284] ss:$8 sps:$4 sm:$0xff]   ;;  %v1645_v32 = vld [vmem:[#allocation5 + $0x280] ss:$8 sps:$4 sm:$0xff]  }
  0x44   :  { %699 = vmatprep.subr.bf16.mxu1 %v1643_v40  ;;  %v62_v25 = vld [vmem:[#allocation2] sm:$0xff]  ;;  %v1659_v35 = vld [vmem:[#allocation5 + $0x2a4] ss:$8 sps:$4 sm:$0xff]   ;;  %v1657_v36 = vld [vmem:[#allocation5 + $0x2a0] ss:$8 sps:$4 sm:$0xff]  }
  0x45   :  { %745 = vmatpush1.bf16.msra.mxu0 %v1576_v19  ;;  %v1629_v19 = vld [vmem:[#allocation5 + $0x254] ss:$8 sps:$4 sm:$0xff]   ;;  %v1671_v39 = vld [vmem:[#allocation5 + $0x2c4] ss:$8 sps:$4 sm:$0xff]   ;;  %v1669_v40 = vld [vmem:[#allocation5 + $0x2c0] ss:$8 sps:$4 sm:$0xff]  }
  0x46   :  { %746 = vmatprep.subr.bf16.mxu0 %v1577_v20  ;;  %v1696_v20 = vld [vmem:[#allocation5 + $0xe0] ss:$8 sps:$4 sm:$0xff]   ;;  %v75_v54 = vld [vmem:[#allocation2 + $0x68] sm:$0xff] }
  0x47   :  { %700 = vmatpush1.bf16.msra.mxu1 %v1648_v43  ;;  %v1683_v43 = vld [vmem:[#allocation5 + $0x2e4] ss:$8 sps:$4 sm:$0xff]  }
  0x48   :  { %701 = vmatprep.subr.bf16.mxu1 %v1649_v44  ;;  %v1681_v44 = vld [vmem:[#allocation5 + $0x2e0] ss:$8 sps:$4 sm:$0xff]  }
  0x49   :  { %747 = vmatpush1.bf16.msra.mxu0 %v1579_v23  ;;  %v1635_v23 = vld [vmem:[#allocation5 + $0x264] ss:$8 sps:$4 sm:$0xff]  }
  0x4a   :  { %748 = vmatprep.subr.bf16.mxu0 %v1580_v26  ;;  %v69_v26 = vld [vmem:[#allocation2 + $0x38] sm:$0xff]  ;;  %v1705_v61 = vld [vmem:[%s2047_s3 + $0x10] sm:$0xff]  }
  0x4b   :  { %702 = vmatpush1.bf16.msra.mxu1 %v1654_v47  ;;  %v66_v47 = vld [vmem:[#allocation2 + $0x20] sm:$0xff]  ;;  %v1706_v62 = vld [vmem:[%s2047_s3 + $0x58] sm:$0xff]   ;;  %v1713_v5 = vld [vmem:[%s2047_s3 + $0x30] sm:$0xff]  }
  0x4c   :  { %703 = vmatprep.subr.bf16.mxu1 %v1655_v48  ;;  %v73_v48 = vld [vmem:[#allocation2 + $0x58] sm:$0xff] }
  0x4d   :  { %749 = vmatpush1.bf16.msra.mxu0 %v1582_v29  ;;  %v76_v29 = vpack.c.bf16 %v69_v26, %v62_v25  ;;  %v1714_v6 = vld [vmem:[%s2047_s3 + $0x78] sm:$0xff]  }
  0x4e   :  { %750 = vmatprep.subr.bf16.mxu0 %v1583_v30  ;;  %v1639_v30 = vld [vmem:[#allocation5 + $0x270] ss:$8 sps:$4 sm:$0xff]  }
  0x4f   :  { %704 = vmatpush1.bf16.msra.mxu1 %v1660_v51  ;;  %v1693_v51 = vld [vmem:[#allocation5 + $0x300] ss:$8 sps:$4 sm:$0xff]  }
  0x50   :  { %705 = vmatprep.subr.bf16.mxu1 %v1661_v52  ;;  %v1830_v52 = vmov 0  }
  0x51   :  { %751 = vmatpush1.bf16.msra.mxu0 %v1585_v33  ;;  %v1653_v33 = vld [vmem:[#allocation5 + $0x294] ss:$8 sps:$4 sm:$0xff]  }
  0x52   :  { %752 = vmatprep.subr.bf16.mxu0 %v1586_v34  ;;  %v1651_v34 = vld [vmem:[#allocation5 + $0x290] ss:$8 sps:$4 sm:$0xff]  }
  0x53   :  { %706 = vmatpush1.bf16.msra.mxu1 %v1666_v57  ;;  %v1701_v57 = vld [vmem:[%s2047_s3] sm:$0xff]  }
  0x54   :  { %707 = vmatprep.subr.bf16.mxu1 %v1667_v60  ;;  %v1704_v60 = vld [vmem:[%s2047_s3 + $0x50] sm:$0xff]  }
  0x55   :  { %753 = vmatpush1.bf16.msra.mxu0 %v1588_v37  ;;  %v1665_v37 = vld [vmem:[#allocation5 + $0x2b4] ss:$8 sps:$4 sm:$0xff]  }
  0x56   :  { %754 = vmatprep.subr.bf16.mxu0 %v1589_v38  ;;  %v1663_v38 = vld [vmem:[#allocation5 + $0x2b0] ss:$8 sps:$4 sm:$0xff]  }
  0x57   :  { %708 = vmatpush1.bf16.msra.mxu1 %v1672_v1  ;;  %v1709_v1 = vld [vmem:[%s2047_s3 + $0x20] sm:$0xff]  }
  0x58   :  { %709 = vmatprep.subr.bf16.mxu1 %v1673_v2  ;;  %v1710_v2 = vld [vmem:[%s2047_s3 + $0x68] sm:$0xff]  }
  0x59   :  { %755 = vmatpush1.bf16.msra.mxu0 %v1591_v41  ;;  %v1677_v41 = vld [vmem:[#allocation5 + $0x2d4] ss:$8 sps:$4 sm:$0xff]  }
  0x5a   :  { %756 = vmatprep.subr.bf16.mxu0 %v1592_v42  ;;  %v1675_v42 = vld [vmem:[#allocation5 + $0x2d0] ss:$8 sps:$4 sm:$0xff]  }
  0x5b   :  { %710 = vmatpush1.bf16.msra.mxu1 %v1678_v8  ;;  %v1831_v8 = vmov 0.0  }
  0x5c   :  { %711 = vmatprep.subr.bf16.mxu1 %v1679_v11 }
  0x5d   :  { %757 = vmatpush1.bf16.msra.mxu0 %v1594_v45  ;;  %v1689_v45 = vld [vmem:[#allocation5 + $0x2f4] ss:$8 sps:$4 sm:$0xff]  }
  0x5e   :  { %758 = vmatprep.subr.bf16.mxu0 %v1595_v46  ;;  %v1687_v46 = vld [vmem:[#allocation5 + $0x2f0] ss:$8 sps:$4 sm:$0xff]  }
  0x5f   :  { %712 = vmatpush1.bf16.msra.mxu1 %v1684_v12 }
  0x60   :  { %713 = vmatprep.subr.bf16.mxu1 %v1685_v13  ;;  %v183_v13 = vlaneseq }
  0x61   :  { %759 = vmatpush1.bf16.msra.mxu0 %v1597_v49  ;;  %v1695_v49 = vld [vmem:[#allocation5 + $0x304] ss:$8 sps:$4 sm:$0xff]  }
  0x62   :  { %760 = vmatprep.subr.bf16.mxu0 %v1598_v50  ;;  %v80_v50 = vpack.c.bf16 %v73_v48, %v66_v47 }
  0x63   :  { %714 = vmatpush1.bf16.msra.mxu1 %v1690_v16  ;;  %v181_v16 = vld [vmem:[%s2046_s2] sm:$0x3] }
  0x64   :  { %715 = vmatprep.subr.bf16.mxu1 %v1691_v17 }
  0x65   :  { %761 = vmatpush1.bf16.msra.mxu0 %v1600_v53  ;;  %v68_v53 = vld [vmem:[#allocation2 + $0x30] sm:$0xff] }
  0x66   :  { %773 = vmatprep.subr.bf16.mxu0 %v1603_v56  ;;  %v82_v55 = vpack.c.bf16 %v75_v54, %v68_v53  ;;  %v1700_v56 = vld [vmem:[%s2047_s3 + $0x40] sm:$0xff]  }
  0x67   :  { %716 = vmatpush1.bf16.msra.mxu1 %v1696_v20 }
  0x68   :  { %763 = vmatmul.mubr.bf16.vlgmr.msra.gmra.mrb[0].mxu0 %v78_v59  ;;  %717 = vmatprep.subr.bf16.mxu1 %v1697_v21  ;;  %v1703_v59 = vld [vmem:[%s2047_s3 + $0x8] sm:$0xff]  }
  0x69   :  { %774 = vmatpush1.bf16.msra.mxu0 %v1601_v58  ;;  %805 = vmatprep.mubr.bf16.mxu0 %v81_v0  ;;  %v1702_v58 = vld [vmem:[%s2047_s3 + $0x48] sm:$0xff]   ;;  %v1708_v0 = vld [vmem:[%s2047_s3 + $0x60] sm:$0xff]  }
  0x6a   :  { %775 = vmatprep.subr.bf16.mxu0 %v1606_v63  ;;  %v1707_v63 = vld [vmem:[%s2047_s3 + $0x18] sm:$0xff]  }
  0x6b   :  { %718 = vmatpush1.bf16.msra.mxu1 %v1699_v24 }
  0x6c   :  { %1459 = vmatprep.subr.bf16.mxu1 %v1700_v56 }
  0x6d   :  { %776 = vmatpush1.bf16.msra.mxu0 %v1604_v3  ;;  %v1711_v3 = vld [vmem:[%s2047_s3 + $0x28] sm:$0xff]  }
  0x6e   :  { %777 = vmatprep.subr.bf16.mxu0 %v1611_v4  ;;  %720 = vmatmul.mubr.bf16.vlgmr.msra.gmra.mrb[0].mxu1 %v76_v29  ;;  %v1712_v4 = vld [vmem:[%s2047_s3 + $0x70] sm:$0xff]  }
  0x6f   :  { %1460 = vmatpush3.bf16.msra.mxu1 %v1701_v57 }
  0x70   :  { %1461 = vmatprep.subr.bf16.mxu1 %v1702_v58 }
  0x71   :  { %778 = vmatpush1.bf16.msra.mxu0 %v1609_v7  ;;  %v1715_v7 = vld [vmem:[%s2047_s3 + $0x38] sm:$0xff]  }
  0x72   :  { %779 = vmatprep.subr.bf16.mxu0 %v1617_v10 }
  0x73   :  { %1462 = vmatpush3.bf16.msra.mxu1 %v1703_v59 }
  0x74   :  { %1463 = vmatprep.subr.bf16.mxu1 %v1704_v60 }
  0x75   :  { %780 = vmatpush1.bf16.msra.mxu0 %v1615_v14  ;;  %v184_v14 = vshrl.u32 %v183_v13, 7  ;;  %v1718_v13 = vld [vmem:[%s2049_s5 + $0x10] sm:$0xff]  }
  0x76   :  { %781 = vmatprep.subr.bf16.mxu0 %v1623_v15 }
  0x77   :  { %1464 = vmatpush3.bf16.msra.mxu1 %v1705_v61  ;;  %v185_v15 = vsub.s32 0, %v184_v14  ;;  %v189_v17 = vsub.s32 1, %v184_v14  ;;  %v1719_v14 = vld [vmem:[%s2049_s5 + $0x18] sm:$0xff]  }
  0x78   :  { %1465 = vmatprep.subr.bf16.mxu1 %v1706_v62 }
  0x79   :  { %782 = vmatpush1.bf16.msra.mxu0 %v1621_v18  ;;  %v186_v18 = vrot.slane %v181_v16, %v185_v15  ;;  %v1720_v15 = vld [vmem:[%s2049_s5 + $0x20] sm:$0xff]  }
  0x7a   :  { %783 = vmatprep.subr.bf16.mxu0 %v1629_v19  ;;  %v190_v19 = vrot.slane %v181_v16, %v189_v17  ;;  %v1721_v16 = vld [vmem:[%s2049_s5 + $0x28] sm:$0xff]   ;;  %v1722_v17 = vld [vmem:[%s2049_s5 + $0x30] sm:$0xff]  }
  0x7b   :  { %1466 = vmatpush3.bf16.msra.mxu1 %v1707_v63 }
  0x7c   :  { %1467 = vmatprep.subr.bf16.mxu1 %v1708_v0 }
  0x7d   :  { %784 = vmatpush1.bf16.msra.mxu0 %v1627_v22 }
  0x7e   :  { %785 = vmatprep.subr.bf16.mxu0 %v1635_v23 }
  0x7f   :  { %1468 = vmatpush3.bf16.msra.mxu1 %v1709_v1 }
  0x80   :  { %1469 = vmatprep.subr.bf16.mxu1 %v1710_v2 }
  0x81   :  { %786 = vmatpush1.bf16.msra.mxu0 %v1633_v27 }
  0x82   :  { %787 = vmatprep.subr.bf16.mxu0 %v1641_v28 }
  0x83   :  { %1470 = vmatpush3.bf16.msra.mxu1 %v1711_v3 }
  0x84   :  { %1471 = vmatprep.subr.bf16.mxu1 %v1712_v4 }
  0x85   :  { %788 = vmatpush1.bf16.msra.mxu0 %v1639_v30 }
  0x86   :  { %789 = vmatprep.subr.bf16.mxu0 %v1647_v31 }
  0x87   :  { %1472 = vmatpush3.bf16.msra.mxu1 %v1713_v5 }
  0x88   :  { %1473 = vmatprep.subr.bf16.mxu1 %v1714_v6 }
  0x89   :  { %790 = vmatpush1.bf16.msra.mxu0 %v1645_v32 }
  0x8a   :  { %791 = vmatprep.subr.bf16.mxu0 %v1653_v33 }
  0x8b   :  { %1474 = vmatpush3.bf16.msra.mxu1 %v1715_v7 }
  0x8c   :  { %1495 = vmatprep.subr.bf16.mxu1 %v1831_v8 }
  0x8d   :  { %792 = vmatpush1.bf16.msra.mxu0 %v1651_v34 }
  0x8e   :  { %793 = vmatprep.subr.bf16.mxu0 %v1659_v35 }
  0x91   :  { %794 = vmatpush1.bf16.msra.mxu0 %v1657_v36 }
  0x92   :  { %795 = vmatprep.subr.bf16.mxu0 %v1665_v37 }
  0x95   :  { %796 = vmatpush1.bf16.msra.mxu0 %v1663_v38 }
  0x96   :  { %797 = vmatprep.subr.bf16.mxu0 %v1671_v39 }
  0x99   :  { %798 = vmatpush1.bf16.msra.mxu0 %v1669_v40 }
  0x9a   :  { %799 = vmatprep.subr.bf16.mxu0 %v1677_v41 }
  0x9d   :  { %800 = vmatpush1.bf16.msra.mxu0 %v1675_v42 }
  0x9e   :  { %801 = vmatprep.subr.bf16.mxu0 %v1683_v43 }
  0xa1   :  { %802 = vmatpush1.bf16.msra.mxu0 %v1681_v44 }
  0xa2   :  { %803 = vmatprep.subr.bf16.mxu0 %v1689_v45 }
  0xa5   :  { %804 = vmatpush1.bf16.msra.mxu0 %v1687_v46 }
  0xa6   :  { %816 = vmatprep.subr.bf16.mxu0 %v1695_v49 }
  0xa8   :  { %806 = vmatmul.mubr.bf16.vlgmr.msra.gmra.mrb[0].mxu0 %v80_v50 }
  0xa9   :  { %817 = vmatpush1.bf16.msra.mxu0 %v1693_v51  ;;  %848 = vmatprep.mubr.bf16.mxu0 %v1830_v52 }
  0xb4   :  { %1422 = vmatmul.mubr.msk.bf16.vlgmr.msra.gmra.mrb[0].mxu0 %vm683_vm0, %v82_v55 }
 0x141   :  { %v721_v9 = vpop.f32.mrb[0].mxu1 }
 0x142   :  { %v723_v10 = vpop.f32.mrb[1].mxu1  ;;  %v722_v20 = vadd.f32 %v721_v9, %v186_v18 }
 0x143   :  { %v725_v11 = vpop.f32.mrb[2].mxu1  ;;  %v724_v21 = vadd.f32 %v723_v10, %v190_v19 }
 0x144   :  { %v727_v12 = vpop.f32.mrb[3].mxu1  ;;  %v726_v23 = vadd.f32 %v725_v11, %v186_v18  ;;  %v1716_v11 = vld [vmem:[%s2049_s5] sm:$0xff]   ;;  %v1723_v18 = vld [vmem:[%s2049_s5 + $0x38] sm:$0xff]  }
 0x145   :  { %v728_v26 = vadd.f32 %v727_v12, %v190_v19  ;;  %v1717_v12 = vld [vmem:[%s2049_s5 + $0x8] sm:$0xff]  }
 0x187   :  { %v850_v22 = vpop.f32.mrb[0].mxu0 }
 0x188   :  { %v1528_v24 = vadd.f32 %v850_v22, %v722_v20  ;;  %v852_v25 = vpop.f32.mrb[1].mxu0  ;;  %v1427_v20 = vld [vmem:[%s2048_s4] ss:$0 sm:$0xff] }
 0x189   :  { %v1530_v27 = vadd.f32 %v852_v25, %v724_v21  ;;  %v854_v28 = vpop.f32.mrb[2].mxu0 }
 0x18a   :  { %v859_v29 = vmin.f32 %v1528_v24, 20.0  ;;  %v1532_v30 = vadd.f32 %v854_v28, %v726_v23  ;;  %v856_v31 = vpop.f32.mrb[3].mxu0 }
 0x18b   :  { %v860_v32 = vmin.f32 %v1530_v27, 20.0  ;;  %v1534_v33 = vadd.f32 %v856_v31, %v728_v26 }
 0x18c   :  { %v863_v34 = vmul.f32 1.442695, %v859_v29  ;;  %v861_v35 = vmin.f32 %v1532_v30, 20.0 }
 0x18d   :  { %v865_v36 = vmul.f32 1.442695, %v860_v32  ;;  %v862_v37 = vmin.f32 %v1534_v33, 20.0  ;;  %v1725_v32 = vld [vmem:[%s2051_s7 + $0x8] sm:$0xff]  }
 0x18e   :  { %1728 = vpow2.f32 %v863_v34  ;;  %v867_v38 = vmul.f32 1.442695, %v861_v35  ;;  %v1727_v34 = vld [vmem:[%s2051_s7 + $0x18] sm:$0xff]   ;;  %v1444_v35 = vld [vmem:[%s2050_s6] ss:$0 sm:$0xff]  ;;  %s1833_s6 = smov [#allocation7]  }
 0x18f   :  { %1730 = vpow2.f32 %v865_v36  ;;  %v869_v39 = vmul.f32 1.442695, %v862_v37 }
 0x190   :  { %1732 = vpow2.f32 %v867_v38 }
 0x191   :  { %1734 = vpow2.f32 %v869_v39 }
 0x198   :  { %v1729_v40 = vpop.eup %1728 }
 0x199   :  { %v1731_v41 = vpop.eup %1730  ;;  %v871_v42 = vadd.f32 1.0, %v1729_v40 }
 0x19a   :  { %v1733_v43 = vpop.eup %1732  ;;  %v872_v44 = vadd.f32 1.0, %v1731_v41 }
 0x19b   :  { %v1735_v45 = vpop.eup %1734  ;;  %v875_v46 = vmul.f32 %v871_v42, %v871_v42  ;;  %v873_v47 = vadd.f32 1.0, %v1733_v43 }
 0x19c   :  { %v876_v48 = vmul.f32 %v872_v44, %v872_v44  ;;  %v874_v49 = vadd.f32 1.0, %v1735_v45 }
 0x19d   :  { %v887_v50 = vadd.f32 1.0, %v875_v46  ;;  %v877_v51 = vmul.f32 %v873_v47, %v873_v47  ;;  %v1423_v56 = vadd.f32 -1.0, %v875_v46 }
 0x19e   :  { %v888_v52 = vadd.f32 1.0, %v876_v48  ;;  %v878_v53 = vmul.f32 %v874_v49, %v874_v49  ;;  %v1424_v58 = vadd.f32 -1.0, %v876_v48 }
 0x19f   :  { %1736 = vrcp.f32 %v887_v50  ;;  %v889_v54 = vadd.f32 1.0, %v877_v51  ;;  %v1425_v57 = vadd.f32 -1.0, %v877_v51  ;;  %v883_v62 = vmul.f32 %v1528_v24, %v1423_v56 }
 0x1a0   :  { %1738 = vrcp.f32 %v888_v52  ;;  %v890_v55 = vadd.f32 1.0, %v878_v53  ;;  %v1426_v59 = vadd.f32 -1.0, %v878_v53  ;;  %v884_v1 = vmul.f32 %v1530_v27, %v1424_v58 }
 0x1a1   :  { %1740 = vrcp.f32 %v889_v54  ;;  %v885_v63 = vmul.f32 %v1532_v30, %v1425_v57  ;;  %v1724_v30 = vld [vmem:[%s2051_s7] sm:$0xff]  }
 0x1a2   :  { %1742 = vrcp.f32 %v890_v55  ;;  %v886_v2 = vmul.f32 %v1534_v33, %v1426_v59  ;;  %v1726_v33 = vld [vmem:[%s2051_s7 + $0x10] sm:$0xff]   ;;  %s1311_s7 = sshll.u32 %s1833_s6, 4  ;;  %s1312_s7 = int_to_ptr.vmem [resolvable:$true] %s1311_s7 }
 0x1a3   :  { %p1801_p3 = scmp.lt.s32.totalorder %s1312_s7, %s1312_s7 }
 0x1a9   :  { %v1737_v60 = vpop.eup %1736 }
 0x1aa   :  { %v1739_v61 = vpop.eup %1738  ;;  %v895_v4 = vmul.f32 %v1737_v60, %v883_v62 }
 0x1ab   :  { %v1741_v0 = vpop.eup %1740  ;;  %v896_v6 = vmul.f32 %v1739_v61, %v884_v1 }
 0x1ac   :  { %v1743_v3 = vpop.eup %1742  ;;  %v897_v5 = vmul.f32 %v1741_v0, %v885_v63 }
 0x1ad   :  { %v898_v7 = vmul.f32 %v1743_v3, %v886_v2 }
 0x1ae   :  { %v899_v9 = vpack.c.bf16 %v897_v5, %v895_v4 }
 0x1af   :  { %v900_v10 = vpack.c.bf16 %v898_v7, %v896_v6 }
 0x1b1   :  { %1068 = vmatprep.mubr.bf16.mxu1 %v900_v10 }
 0x1b2   :  { %1069 = vmatmul.mubr.bf16.vlgmr.msra.gmra.mrb[4].mxu1 %v899_v9 }
 0x1b3   :  { %1496 = vmatpush3.bf16.msra.mxu1 %v1716_v11  ;;  %1511 = vmatprep.mubr.msk.bf16.mxu1 %vm1832_vm1, %v1831_v8 }
 0x1b4   :  { %1497 = vmatprep.subr.bf16.mxu1 %v1831_v8 }
 0x1b7   :  { %1498 = vmatpush3.bf16.msra.mxu1 %v1717_v12 }
 0x1b8   :  { %1499 = vmatprep.subr.bf16.mxu1 %v1831_v8 }
 0x1bb   :  { %1500 = vmatpush3.bf16.msra.mxu1 %v1718_v13 }
 0x1bc   :  { %1501 = vmatprep.subr.bf16.mxu1 %v1831_v8 }
 0x1bf   :  { %1502 = vmatpush3.bf16.msra.mxu1 %v1719_v14 }
 0x1c0   :  { %1503 = vmatprep.subr.bf16.mxu1 %v1831_v8 }
 0x1c3   :  { %1504 = vmatpush3.bf16.msra.mxu1 %v1720_v15 }
 0x1c4   :  { %1505 = vmatprep.subr.bf16.mxu1 %v1831_v8 }
 0x1c7   :  { %1506 = vmatpush3.bf16.msra.mxu1 %v1721_v16 }
 0x1c8   :  { %1507 = vmatprep.subr.bf16.mxu1 %v1831_v8 }
 0x1cb   :  { %1508 = vmatpush3.bf16.msra.mxu1 %v1722_v17 }
 0x1cc   :  { %1509 = vmatprep.subr.bf16.mxu1 %v1831_v8 }
 0x1cf   :  { %1510 = vmatpush3.bf16.msra.mxu1 %v1723_v18 }
 0x1d0   :  { %1515 = vmatprep.subr.bf16.mxu1 %v1831_v8 }
 0x285   :  { %v1475_v19 = vpop.f32.mrb[4].mxu1 }
 0x286   :  { %v1476_v21 = vpop.f32.mrb[5].mxu1 }
 0x287   :  { %v1477_v22 = vadd.f32 %v1476_v21, %v1475_v19  ;;  %v1478_v23 = vpop.f32.mrb[6].mxu1 }
 0x288   :  { %v1479_v24 = vpop.f32.mrb[7].mxu1 }
 0x289   :  { %v1071_v25 = vadd.f32 %v1477_v22, %v1427_v20  ;;  %v1480_v26 = vadd.f32 %v1479_v24, %v1478_v23 }
 0x28b   :  { %v1074_v27 = vadd.f32 %v1480_v26, %v1427_v20  ;;  %v1077_v28 = vmax.f32 %v1071_v25, 0.0 }
 0x28d   :  { %v1078_v29 = vmax.f32 %v1074_v27, 0.0 }
 0x28f   :  { %v1079_v31 = vpack.c.bf16 %v1078_v29, %v1077_v28 }
 0x291   :  { %1512 = vmatmul.mubr.bf16.vlgmr.msra.gmra.mrb[8].mxu1 %v1079_v31 }
 0x292   :  { %1516 = vmatpush3.bf16.msra.mxu1 %v1724_v30  ;;  %1523 = vmatprep.mubr.msk.bf16.mxu1 %vm1832_vm1, %v1831_v8 }
 0x293   :  { %1517 = vmatprep.subr.bf16.mxu1 %v1831_v8 }
 0x296   :  { %1518 = vmatpush3.bf16.msra.mxu1 %v1725_v32 }
 0x297   :  { %1519 = vmatprep.subr.bf16.mxu1 %v1831_v8 }
 0x29a   :  { %1520 = vmatpush3.bf16.msra.mxu1 %v1726_v33 }
 0x29b   :  { %1521 = vmatprep.subr.bf16.mxu1 %v1831_v8  ;;  %v1453_v8 = vld [vmem:[%s2052_s8] ss:$0 sm:$0xff]  ;;  %s1796_s8 = scalar_lea.vmem %s1312_s7, 256 }
 0x29c   :  { %p1797_p2 = scmp.ne.s32.totalorder %s1312_s7, %s1796_s8  ;;  %p1802_p4 = scmp.lt.s32.totalorder %s1796_s8, %s1796_s8 }
 0x29e   :  { %1522 = vmatpush3.bf16.msra.mxu1 %v1727_v34  ;;  %p1803_p5 = por %p1802_p4, %p1801_p3 }
 0x2a0   :  { %p1804_p6 = pnand %p1803_p5, %p1797_p2 }
 0x364   :  { %v1185_v36 = vpop.f32.mrb[8].mxu1 }
 0x365   :  { %v1186_v37 = vadd.f32 %v1444_v35, %v1185_v36  ;;  %v1513_v38 = vpop.f32.mrb[9].mxu1 }
 0x366   :  { %v1188_v39 = vpop.f32.mrb[10].mxu1 }
 0x367   :  { %v1189_v40 = vadd.f32 %v1444_v35, %v1188_v39  ;;  %v1514_v41 = vpop.f32.mrb[11].mxu1  ;;  %v1192_v42 = vmax.f32 %v1186_v37, 0.0 }
 0x369   :  { %v1193_v43 = vmax.f32 %v1189_v40, 0.0 }
 0x36b   :  { %v1194_v44 = vpack.c.bf16 %v1193_v43, %v1192_v42 }
 0x36d   :  { %1524 = vmatmul.mubr.msk.bf16.vlgmr.msra.gmra.mrb[12].mxu1 %vm1234_vm2, %v1194_v44 }
 0x440   :  { %v1272_v45 = vpop.f32.mrb[12].mxu1 }
 0x441   :  { %v1273_v46 = vadd.f32 %v1453_v8, %v1272_v45  ;;  %v1525_v47 = vpop.f32.mrb[13].mxu1 }
 0x442   :  { %v1275_v48 = vpop.f32.mrb[14].mxu1 }
 0x443   :  { %v1276_v49 = vadd.f32 %v1453_v8, %v1275_v48  ;;  %v1526_v50 = vpop.f32.mrb[15].mxu1  ;;  %v1280_v51 = vsel %vm1279_vm3, %v1273_v46, -inf }
 0x444   :  { %1281 = vmax.xlane.f32.xlu0 %v1280_v51 }
 0x445   :  { %v1283_v52 = vsel %vm1279_vm3, %v1276_v49, -inf }
 0x448   :  { %1284 = vmax.xlane.f32.xlu0 %v1283_v52 }
 0x4d1   :  { %v1282_v53 = vpop.xlane.xlu0 %1281 }
 0x4d2   :  { %v1286_v54 = vsub.f32 %v1273_v46, %v1282_v53 }
 0x4d4   :  { %v1288_v55 = vmul.f32 1.442695, %v1286_v54 }
 0x4d5   :  { %v1285_v56 = vpop.xlane.xlu0 %1284 }
 0x4d6   :  { %1744 = vpow2.f32 %v1288_v55  ;;  %v1287_v57 = vsub.f32 %v1276_v49, %v1285_v56 }
 0x4d8   :  { %v1290_v58 = vmul.f32 1.442695, %v1287_v57 }
 0x4da   :  { %1746 = vpow2.f32 %v1290_v58 }
 0x4e0   :  { %v1745_v59 = vpop.eup %1744 }
 0x4e1   :  { %v1292_v60 = vsel %vm1279_vm3, %v1745_v59, 0.0 }
 0x4e2   :  { %1293 = vadd.xlane.f32.xlu1 %v1292_v60 }
 0x4e4   :  { %v1747_v61 = vpop.eup %1746 }
 0x4e5   :  { %v1295_v62 = vsel %vm1279_vm3, %v1747_v61, 0.0 }
 0x4e6   :  { %1296 = vadd.xlane.f32.xlu1 %v1295_v62 }
 0x56f   :  { %v1294_v63 = vpop.xlane.xlu1 %1293 }
 0x570   :  { %1748 = vlog2.f32 %v1294_v63 }
 0x573   :  { %v1297_v0 = vpop.xlane.xlu1 %1296 }
 0x574   :  { %1750 = vlog2.f32 %v1297_v0 }
 0x57a   :  { %v1749_v1 = vpop.eup %1748 }
 0x57b   :  { %v1299_v2 = vmul.f32 0.6931472, %v1749_v1 }
 0x57d   :  { %v1302_v3 = vsub.f32 %v1286_v54, %v1299_v2 }
 0x57e   :  { %v1751_v4 = vpop.eup %1750 }
 0x57f   :  { %1304 = vst.msk [vmem:[#allocation7] sm:$0xff] %vm1279_vm3, %v1302_v3  ;;  %v1301_v5 = vmul.f32 0.6931472, %v1751_v4 }
 0x581   :  { %v1303_v6 = vsub.f32 %v1287_v57, %v1301_v5 }
 0x583   :  { %1305 = vst.msk [vmem:[#allocation7 + $0x8] sm:$0xff] %vm1279_vm3, %v1303_v6 }
 0x584   :  { %1807 = shalt.err (!%p1804_p6)
}
 0x585   :  { %s1808_s12 = scalar_lea.hbm %s2053_s9, 256 }
 0x586   :  { %p1809_p7 = scmp.ne.s32.totalorder %s2053_s9, %s1808_s12  ;;  %p1812_p8 = scmp.lt.u32.totalorder %s1808_s12, %s2053_s9 }
 0x588   :  { %p1814_p9 = pnand %p1812_p8, %p1809_p7 }
 0x58a   :  { %1817 = shalt.err (!%p1814_p9)
}
 0x58b   :  { %1317 = dma.vmem_to_hbm [thread:$0]  %s1312_s7, 256, %s2053_s9, [#allocation4], %s1828_s0, %s1828_s0, %s1829_s10  }
 0x58c   :  { %1822 = dma.done.wait [#allocation4], 256  }
 0x58d   :  { %1823 = vsyncadd [#allocation4], 4294967040 }
 0x58e   :  { %1321 = vsyncpa [#allocation3], 1 }
 0x58f   :  { %1322 = vsyncpa [#allocation6], 1 }
 0x590   :  { %1323 = vsyncpa [#allocation4], 1 }

</bundles_post_ra>
